<compile_context>
chip_gen: v6e
topology: v6e:2x2x1
jax: 0.10.0
libtpu: 0.0.40
codegen_flags: <defaults>
</compile_context>

<pallas_src>
import functools

import jax
import jax.numpy as jnp
from jax.experimental import pallas as pl
from jax.experimental.pallas import tpu as pltpu

BN_EPS = 1e-5
EXPANSION = 4


# --------------------------------------------------------------------------- helpers
def _pick_row_tile(H, W, cwide):
    """Largest multiple-of-8 divisor of H (< H) whose f32 row tile stays <= ~1 MiB.
    Falls back to the full height when H cannot be split on an 8-row boundary."""
    if H % 8 != 0 or H <= 8:
        return H
    divisors = [d for d in range(8, H, 8) if H % d == 0]
    if not divisors:
        return H
    th = H
    for d in sorted(divisors, reverse=True):
        th = d
        if d * W * cwide * 4 <= (1 << 20):
            break
    return th


def _params(block_bytes, scratch_bytes=0):
    """Generation-aware VMEM limit derived from the double-buffered block bytes."""
    try:
        cap = int(pltpu.get_tpu_info().vmem_capacity_bytes)
    except Exception:                       # query is best effort
        cap = 64 << 20
    ceiling = min(48 << 20, (cap * 5) // 8)  # ~40 MiB on v7x (64 MiB), 48 MiB on v5e/v6e
    est = 2 * int(block_bytes) + int(scratch_bytes) + (4 << 20)
    limit = int(min(max(est, 16 << 20), ceiling))
    return pltpu.CompilerParams(dimension_semantics=("parallel", "parallel"),
                                vmem_limit_bytes=limit)


def _tile_stats(t, count_t):
    """Per-tile BN partials [sum, centered M2] (Chan-combinable; avoids the
    E[x^2]-E[x]^2 cancellation).  t: (Mt, C) f32 -> (1, 2, C) f32."""
    s = jnp.sum(t, axis=0, keepdims=True)
    d = t - s * (1.0 / count_t)
    m2 = jnp.sum(d * d, axis=0, keepdims=True)
    return jnp.concatenate([s, m2], axis=0)[None]


def _bn_from_stats(stats, count_t, total):
    """Chan-combine per-tile [sum, M2] partials -> train-mode BN scale/bias, each (1, C)."""
    sums = stats[:, 0, :]                                  # (T, C)
    m2s = stats[:, 1, :]                                   # (T, C)
    mean = jnp.sum(sums, axis=0, keepdims=True) / total    # (1, C)
    d = sums - count_t * mean
    var = (jnp.sum(m2s, axis=0, keepdims=True)
           + jnp.sum(d * d, axis=0, keepdims=True) * (1.0 / count_t)) / total
    rstd = jax.lax.rsqrt(jnp.maximum(var, 0.0) + BN_EPS)
    return rstd, -mean * rstd


# --------------------------------------------------------------------------- stage 1
def _conv1_kernel(*refs, has_injection, count_t):
    if has_injection:
        x_ref, inj_ref, w1_ref, t1_ref, s_ref = refs
    else:
        x_ref, w1_ref, t1_ref, s_ref = refs
    x = x_ref[0].astype(w1_ref.dtype)                      # MXU operands in weight dtype
    t = jnp.dot(x, w1_ref[...], preferred_element_type=jnp.float32)
    if has_injection:
        t = t + inj_ref[0].astype(jnp.float32)
    t1_ref[...] = t[None].astype(t1_ref.dtype)
    s_ref[...] = _tile_stats(t, count_t)


# --------------------------------------------------------------------------- stage 2
def _conv2_kernel(*refs, W, count_t, total, has_halo):
    if has_halo:
        t1_ref, top_ref, bot_ref, s1_ref, w2_ref, t2_ref, s_ref = refs
    else:
        t1_ref, s1_ref, w2_ref, t2_ref, s_ref = refs
    f32 = jnp.float32
    P = w2_ref.shape[2]
    Mt = t1_ref.shape[1]

    scale, bias = _bn_from_stats(s1_ref[...], count_t, total)      # bn1 (f32)
    y = jnp.maximum(t1_ref[0].astype(f32) * scale + bias, 0.0)     # + relu

    if has_halo:
        h = pl.program_id(1)
        nh = pl.num_programs(1)
        hw = top_ref.shape[1]
        top = jnp.maximum(top_ref[0][hw - W:, :].astype(f32) * scale + bias, 0.0)
        bot = jnp.maximum(bot_ref[0][:W, :].astype(f32) * scale + bias, 0.0)
        top = top * (h != 0).astype(f32)            # zero pad at the image top edge
        bot = bot * (h != nh - 1).astype(f32)       # zero pad at the image bottom edge
    else:
        top = jnp.zeros((W, P), f32)
        bot = jnp.zeros((W, P), f32)

    # H-padded row tile, kept flattened; dy taps become aligned row-offset slices.
    ypad = jnp.concatenate([top, y, bot], axis=0)                  # (Mt + 2W, P)
    L = Mt + 2 * W
    widx = jax.lax.broadcasted_iota(jnp.int32, (L, 1), 0) % W
    # dx = -1 / +1 taps as XLU sublane rotations + column-edge mask (no im2col slab).
    y_m1 = jnp.where(widx == 0, 0.0, pltpu.roll(ypad, 1, axis=0))        # y[.., w-1]
    y_p1 = jnp.where(widx == W - 1, 0.0, pltpu.roll(ypad, L - 1, axis=0))  # y[.., w+1]

    cdt = w2_ref.dtype
    shifted = (y_m1.astype(cdt), ypad.astype(cdt), y_p1.astype(cdt))

    # 9 accumulating MXU matmuls on row-offset views of the padded tile.
    acc = jnp.zeros((Mt, P), f32)
    for kh in range(3):
        base = kh * W
        for kw in range(3):
            acc = acc + jnp.dot(shifted[kw][base:base + Mt, :], w2_ref[kh * 3 + kw],
                                preferred_element_type=jnp.float32)
    t2_ref[...] = acc[None].astype(t2_ref.dtype)
    s_ref[...] = _tile_stats(acc, count_t)


# --------------------------------------------------------------------------- stage 3
def _conv3_kernel(t2_ref, s2_ref, w3_ref, t3_ref, s_ref, *, count_t, total):
    f32 = jnp.float32
    scale, bias = _bn_from_stats(s2_ref[...], count_t, total)      # bn2
    z = jnp.maximum(t2_ref[0].astype(f32) * scale + bias, 0.0)     # + relu
    t3 = jnp.dot(z.astype(w3_ref.dtype), w3_ref[...], preferred_element_type=jnp.float32)
    t3_ref[...] = t3[None].astype(t3_ref.dtype)
    s_ref[...] = _tile_stats(t3, count_t)


# --------------------------------------------------------------------------- stage 4
def _residual_kernel(t3_ref, x_ref, s3_ref, o_ref, *, count_t, total):
    f32 = jnp.float32
    scale, bias = _bn_from_stats(s3_ref[...], count_t, total)      # bn3
    out = jnp.maximum(t3_ref[0].astype(f32) * scale + bias + x_ref[0].astype(f32), 0.0)
    o_ref[...] = out[None].astype(o_ref.dtype)


# --------------------------------------------------------------------------- wrapper
def bottleneck(x, w1, w2, w3, injection=None, *, use_bf16=True):
    """x: (N,H,W,Cin) NHWC; w1: (Cin,P); w2: (9,P,P) [k=kh*3+kw, cin, cout]; w3: (P,4P);
    injection: optional (N,H,W,P).  Requires Cin == 4*P (stride=1, identity residual)."""
    N, H, W, C = x.shape
    P = w1.shape[1]
    assert w2.shape == (9, P, P) and w3.shape == (P, EXPANSION * P)
    assert C == EXPANSION * P, "identity residual needs inplanes == planes * expansion"
    # TODO(synk): stride > 1 (and the matching downsample branch) is not implemented.

    f32 = jnp.float32
    cdt = jnp.bfloat16 if use_bf16 else jnp.float32     # MXU-operand / intermediate dtype
    csz = jnp.dtype(cdt).itemsize
    xsz = x.dtype.itemsize
    w1c, w2c, w3c = w1.astype(cdt), w2.astype(cdt), w3.astype(cdt)

    M = H * W
    xm = x.reshape(N, M, C)                             # flattened (free view) activations
    has_inj = injection is not None
    injm = injection.reshape(N, M, P) if has_inj else None

    TH = _pick_row_tile(H, W, C)
    HB = H // TH
    Mt = TH * W
    T = N * HB
    count_t = float(Mt)
    total = float(N * M)
    has_halo = HB > 1
    grid = (N, HB)

    def blk(c):
        return pl.BlockSpec((1, Mt, c), lambda n, h: (n, h, 0))

    def stat_out(c):
        return pl.BlockSpec((1, 2, c), lambda n, h: (n * HB + h, 0, 0))

    def resident(shape):
        nd = len(shape)
        return pl.BlockSpec(shape, lambda n, h: (0,) * nd)

    # ---- stage 1: conv1 (1x1) [+ injection], partial BN1 stats -----------------------
    in_specs1 = [blk(C)] + ([blk(P)] if has_inj else []) + [resident((C, P))]
    args1 = [xm] + ([injm] if has_inj else []) + [w1c]
    blk_bytes1 = (Mt * C * xsz + (Mt * P * injm.dtype.itemsize if has_inj else 0)
                  + C * P * csz + Mt * P * csz + 2 * P * 4)
    t1, s1 = pl.pallas_call(
        functools.partial(_conv1_kernel, has_injection=has_inj, count_t=count_t),
        grid=grid,
        in_specs=in_specs1,
        out_specs=[blk(P), stat_out(P)],
        out_shape=[jax.ShapeDtypeStruct((N, M, P), cdt),
                   jax.ShapeDtypeStruct((T, 2, P), f32)],
        compiler_params=_params(blk_bytes1, scratch_bytes=Mt * (C + 2 * P) * 4),
        cost_estimate=pl.CostEstimate(
            flops=2 * N * M * C * P + (N * M * P if has_inj else 0),
            transcendentals=0,
            bytes_accessed=int(N * M * (C * xsz + (P * 4 if has_inj else 0) + P * csz)
                               + C * P * csz + T * 2 * P * 4)),
    )(*args1)

    # ---- stage 2: bn1 + relu + conv2 (3x3, stride=1, pad=1), partial BN2 stats -------
    if has_halo:
        th8, nbh = TH // 8, H // 8
        halo_top = pl.BlockSpec((1, 8 * W, P),
                                lambda n, h: (n, jnp.maximum(h * th8 - 1, 0), 0))
        halo_bot = pl.BlockSpec((1, 8 * W, P),
                                lambda n, h: (n, jnp.minimum((h + 1) * th8, nbh - 1), 0))
        in_specs2 = [blk(P), halo_top, halo_bot, resident((T, 2, P)), resident((9, P, P))]
        args2 = (t1, t1, t1, s1, w2c)
    else:
        in_specs2 = [blk(P), resident((T, 2, P)), resident((9, P, P))]
        args2 = (t1, s1, w2c)
    blk_bytes2 = ((Mt + (16 * W if has_halo else 0)) * P * csz + T * 2 * P * 4
                  + 9 * P * P * csz + Mt * P * csz + 2 * P * 4)
    t2, s2 = pl.pallas_call(
        functools.partial(_conv2_kernel, W=W, count_t=count_t, total=total,
                          has_halo=has_halo),
        grid=grid,
        in_specs=in_specs2,
        out_specs=[blk(P), stat_out(P)],
        out_shape=[jax.ShapeDtypeStruct((N, M, P), cdt),
                   jax.ShapeDtypeStruct((T, 2, P), f32)],
        compiler_params=_params(blk_bytes2, scratch_bytes=6 * (Mt + 2 * W) * P * 4),
        cost_estimate=pl.CostEstimate(
            flops=2 * N * M * 9 * P * P + 8 * N * M * P, transcendentals=0,
            bytes_accessed=int(2 * N * M * P * csz + 9 * P * P * csz + 2 * T * 2 * P * 4)),
    )(*args2)

    # ---- stage 3: bn2 + relu + conv3 (1x1, P -> 4P), partial BN3 stats ---------------
    blk_bytes3 = Mt * P * csz + T * 2 * P * 4 + P * C * csz + Mt * C * csz + 2 * C * 4
    t3, s3 = pl.pallas_call(
        functools.partial(_conv3_kernel, count_t=count_t, total=total),
        grid=grid,
        in_specs=[blk(P), resident((T, 2, P)), resident((P, C))],
        out_specs=[blk(C), stat_out(C)],
        out_shape=[jax.ShapeDtypeStruct((N, M, C), cdt),
                   jax.ShapeDtypeStruct((T, 2, C), f32)],
        compiler_params=_params(blk_bytes3, scratch_bytes=Mt * (P + 2 * C) * 4),
        cost_estimate=pl.CostEstimate(
            flops=2 * N * M * P * C + 4 * N * M * P, transcendentals=0,
            bytes_accessed=int(N * M * (P + C) * csz + P * C * csz + 2 * T * 2 * C * 4)),
    )(t2, s2, w3c)

    # ---- stage 4: bn3 + identity residual + relu -------------------------------------
    blk_bytes4 = Mt * C * (csz + 2 * xsz) + T * 2 * C * 4
    out = pl.pallas_call(
        functools.partial(_residual_kernel, count_t=count_t, total=total),
        grid=grid,
        in_specs=[blk(C), blk(C), resident((T, 2, C))],
        out_specs=blk(C),
        out_shape=jax.ShapeDtypeStruct((N, M, C), x.dtype),
        compiler_params=_params(blk_bytes4, scratch_bytes=3 * Mt * C * 4),
        cost_estimate=pl.CostEstimate(
            flops=4 * N * M * C, transcendentals=0,
            bytes_accessed=int(N * M * C * (csz + 2 * xsz) + T * 2 * C * 4)),
    )(t3, xm, s3)
    return out.reshape(N, H, W, C)


# --------------------------------------------------------------------------- reference
def _reference(x, w1, w2, w3, injection):
    """Pure-JAX f32 reference of the PyTorch forward (train-mode BN, affine=False)."""
    f32 = jnp.float32
    xf = x.astype(f32)

    def bn(y):
        mu = jnp.mean(y, axis=(0, 1, 2), keepdims=True)
        var = jnp.mean((y - mu) ** 2, axis=(0, 1, 2), keepdims=True)
        return (y - mu) * jax.lax.rsqrt(var + BN_EPS)

    P = w1.shape[1]
    t = jnp.einsum('nhwc,cp->nhwp', xf, w1.astype(f32)) + injection.astype(f32)
    t = jnp.maximum(bn(t), 0.0)
    w2_hwio = w2.astype(f32).reshape(3, 3, P, P)
    t = jax.lax.conv_general_dilated(
        t, w2_hwio, window_strides=(1, 1), padding='SAME',
        dimension_numbers=('NHWC', 'HWIO', 'NHWC'))
    t = jnp.maximum(bn(t), 0.0)
    t = jnp.einsum('nhwc,cp->nhwp', t, w3.astype(f32))
    return jnp.maximum(bn(t) + xf, 0.0)


if __name__ == "__main__":
    # Small shapes consistent with the module: planes=4, inplanes=planes*4=16.
    N, H, W = 2, 16, 16
    planes = 4
    inplanes = planes * EXPANSION  # 16

    key = jax.random.PRNGKey(0)
    kx, ki, k1, k2, k3 = jax.random.split(key, 5)
    x = jax.random.normal(kx, (N, H, W, inplanes), jnp.float32)
    injection = 0.1 * jax.random.normal(ki, (N, H, W, planes), jnp.float32)
    w1 = 0.1 * jax.random.normal(k1, (inplanes, planes), jnp.float32)
    w2 = 0.1 * jax.random.normal(k2, (9, planes, planes), jnp.float32)
    w3 = 0.1 * jax.random.normal(k3, (planes, planes * EXPANSION), jnp.float32)

    ref = jax.block_until_ready(_reference(x, w1, w2, w3, injection))

    # 1) Exact-semantics f32 path (row-tiled with halo: H=16 -> two 8-row tiles).
    out = jax.block_until_ready(bottleneck(x, w1, w2, w3, injection, use_bf16=False))
    assert out.shape == (N, H, W, inplanes)
    err = float(jnp.max(jnp.abs(out - ref)))
    assert jnp.allclose(out, ref, atol=1e-4, rtol=1e-4), f"f32 path max abs err {err}"

    # 2) bf16 fast path (bf16 MXU operands + bf16 intermediates): looser tolerance since
    #    the reference is pure f32.
    out_bf = jax.block_until_ready(bottleneck(x, w1, w2, w3, injection, use_bf16=True))
    diff = out_bf.astype(jnp.float32) - ref
    rel = float(jnp.linalg.norm(diff) / jnp.linalg.norm(ref))
    maxabs = float(jnp.max(jnp.abs(diff)))
    assert rel < 0.08 and maxabs < 0.5, f"bf16 path rel l2 err {rel}, max abs {maxabs}"

    # 3) No injection + H=8 (single row tile -> no-halo kernel variant), exact f32 check.
    Hs = 8
    xs = jax.random.normal(kx, (N, Hs, W, inplanes), jnp.float32)
    ref0 = jax.block_until_ready(
        _reference(xs, w1, w2, w3, jnp.zeros((N, Hs, W, planes), jnp.float32)))
    out0 = jax.block_until_ready(bottleneck(xs, w1, w2, w3, None, use_bf16=False))
    err0 = float(jnp.max(jnp.abs(out0 - ref0)))
    assert jnp.allclose(out0, ref0, atol=1e-4, rtol=1e-4), f"no-injection max abs err {err0}"

    print("KERNEL_OK")
</pallas_src>

<mosaic_0001>
module attributes {stable_mosaic.version = 11 : i64} {
  func.func @_conv1_kernel(%arg0: i32, %arg1: i32, %arg2: memref<1x128x16xf32, #tpu.memory_space<vmem>>, %arg3: memref<1x128x4xf32, #tpu.memory_space<vmem>>, %arg4: memref<16x4xf32, #tpu.memory_space<vmem>>, %arg5: memref<1x128x4xf32, #tpu.memory_space<vmem>>, %arg6: memref<1x2x4xf32, #tpu.memory_space<vmem>>) attributes {dimension_semantics = [#tpu.dimension_semantics<parallel>, #tpu.dimension_semantics<parallel>], iteration_bounds = array<i64: 2, 2>, scalar_prefetch = 0 : i64, scratch_operands = 0 : i64, tpu.core_type = #tpu.core_type<tc>, window_params = [{transform_indices = @transform_0, window_bounds = array<i64: 1, 128, 16>}, {transform_indices = @transform_1, window_bounds = array<i64: 1, 128, 4>}, {pipeline_mode = #tpu.pipeline_mode<synchronous>, transform_indices = @transform_2, window_bounds = array<i64: 16, 4>}, {transform_indices = @transform_3, window_bounds = array<i64: 1, 128, 4>}, {transform_indices = @transform_4, window_bounds = array<i64: 1, 2, 4>}]} {
    %c0 = arith.constant 0 : index
    %c0_0 = arith.constant 0 : index
    %c0_1 = arith.constant 0 : index
    %0 = vector.load %arg2[%c0, %c0_0, %c0_1] : memref<1x128x16xf32, #tpu.memory_space<vmem>>, vector<1x128x16xf32>
    %1 = vector.shape_cast %0 : vector<1x128x16xf32> to vector<128x16xf32>
    %c0_2 = arith.constant 0 : index
    %c0_3 = arith.constant 0 : index
    %2 = vector.load %arg4[%c0_2, %c0_3] : memref<16x4xf32, #tpu.memory_space<vmem>>, vector<16x4xf32>
    %cst = arith.constant dense<0.000000e+00> : vector<128x4xf32>
    %3 = tpu.matmul %1, %2, %cst {dimension_numbers = #tpu.dot_dimension_numbers<[1], [0], [0], [1], [0, 0, 1, 1], [], []>} : vector<128x16xf32>, vector<16x4xf32>, vector<128x4xf32> -> vector<128x4xf32>
    %c0_4 = arith.constant 0 : index
    %c0_5 = arith.constant 0 : index
    %c0_6 = arith.constant 0 : index
    %4 = vector.load %arg3[%c0_4, %c0_5, %c0_6] : memref<1x128x4xf32, #tpu.memory_space<vmem>>, vector<1x128x4xf32>
    %5 = vector.shape_cast %4 : vector<1x128x4xf32> to vector<128x4xf32>
    %6 = arith.addf %3, %5 : vector<128x4xf32>
    %7 = vector.shape_cast %6 : vector<128x4xf32> to vector<1x128x4xf32>
    %c0_7 = arith.constant 0 : index
    %c0_8 = arith.constant 0 : index
    %c0_9 = arith.constant 0 : index
    %8 = vector.load %arg5[%c0_7, %c0_8, %c0_9] : memref<1x128x4xf32, #tpu.memory_space<vmem>>, vector<1x128x4xf32>
    tpu.vector_store %arg5[%c0_7, %c0_8, %c0_9], %7 {strides = array<i32>} : memref<1x128x4xf32, #tpu.memory_space<vmem>>, vector<1x128x4xf32>,
    %cst_10 = arith.constant dense<0.000000e+00> : vector<4xf32>
    %9 = vector.multi_reduction <add>, %6, %cst_10 [0] : vector<128x4xf32> to vector<4xf32>
    %10 = vector.shape_cast %9 : vector<4xf32> to vector<1x4xf32>
    %cst_11 = arith.constant 7.812500e-03 : f32
    %11 = vector.broadcast %cst_11 : f32 to vector<1x4xf32>
    %12 = arith.mulf %10, %11 : vector<1x4xf32>
    %13 = vector.broadcast %12 : vector<1x4xf32> to vector<128x4xf32>
    %14 = arith.subf %6, %13 : vector<128x4xf32>
    %15 = arith.mulf %14, %14 : vector<128x4xf32>
    %cst_12 = arith.constant dense<0.000000e+00> : vector<4xf32>
    %16 = vector.multi_reduction <add>, %15, %cst_12 [0] : vector<128x4xf32> to vector<4xf32>
    %17 = vector.shape_cast %16 : vector<4xf32> to vector<1x4xf32>
    %18 = tpu.concatenate %10, %17 in 0 : vector<1x4xf32>, vector<1x4xf32> -> vector<2x4xf32>
    %19 = vector.shape_cast %18 : vector<2x4xf32> to vector<1x2x4xf32>
    %c0_13 = arith.constant 0 : index
    %c0_14 = arith.constant 0 : index
    %c0_15 = arith.constant 0 : index
    %20 = vector.load %arg6[%c0_13, %c0_14, %c0_15] : memref<1x2x4xf32, #tpu.memory_space<vmem>>, vector<1x2x4xf32>
    tpu.vector_store %arg6[%c0_13, %c0_14, %c0_15], %19 {strides = array<i32>} : memref<1x2x4xf32, #tpu.memory_space<vmem>>, vector<1x2x4xf32>,
    return
  }
  func.func @transform_0(%arg0: i32, %arg1: i32) -> (i32, i32, i32) {
    %c0_i32 = arith.constant 0 : i32
    %c0_i32_0 = arith.constant 0 : i32
    return %arg0, %arg1, %c0_i32 : i32, i32, i32
  }
  func.func @transform_1(%arg0: i32, %arg1: i32) -> (i32, i32, i32) {
    %c0_i32 = arith.constant 0 : i32
    %c0_i32_0 = arith.constant 0 : i32
    return %arg0, %arg1, %c0_i32 : i32, i32, i32
  }
  func.func @transform_2(%arg0: i32, %arg1: i32) -> (i32, i32) {
    %c0_i32 = arith.constant 0 : i32
    %c0_i32_0 = arith.constant 0 : i32
    %c0_i32_1 = arith.constant 0 : i32
    return %c0_i32, %c0_i32_0 : i32, i32
  }
  func.func @transform_3(%arg0: i32, %arg1: i32) -> (i32, i32, i32) {
    %c0_i32 = arith.constant 0 : i32
    %c0_i32_0 = arith.constant 0 : i32
    return %arg0, %arg1, %c0_i32 : i32, i32, i32
  }
  func.func @transform_4(%arg0: i32, %arg1: i32) -> (i32, i32, i32) {
    %c2_i32 = arith.constant 2 : i32
    %0 = arith.muli %arg0, %c2_i32 : i32
    %1 = arith.addi %0, %arg1 : i32
    %c0_i32 = arith.constant 0 : i32
    %c0_i32_0 = arith.constant 0 : i32
    %c0_i32_1 = arith.constant 0 : i32
    return %1, %c0_i32, %c0_i32_0 : i32, i32, i32
  }
}

</mosaic_0001>

<bundles_post_ra>
// kernel: tpu_custom_call.1
= control target key start
LH: loop header
LB: loop body
LE: loop exit
PB: predicated region body
PF: predicated region fallthrough
CT: control target
= control target key end

     0   :  { %10 = vsyncpa [#allocation3], 0  ;;  %s1387_s0 = inlined_call_operand.vmem [shape: f32[2,256,16], index: 0, kind: input, shape index: {}]   ;;  %s1388_s1 = inlined_call_operand.vmem [shape: f32[2,256,4], index: 1, kind: input, shape index: {}]   ;;  %s1389_s2 = inlined_call_operand.vmem [shape: f32[16,4], index: 2, kind: input, shape index: {}]   ;;  %s1390_s3 = inlined_call_operand.vmem [shape: f32[2,256,4], index: 3, kind: output, shape index: {0}]   ;;  %s1391_s4 = inlined_call_operand.hbm [shape: f32[4,2,4], index: 4, kind: output, shape index: {1}]  }
   0x1   :  { %12 = vsyncpa [#allocation3 + $0x1], 0  ;;  %s1087_s15 = smov 0   ;;  %s1089_s16 = smov 0  }
   0x2   :  { %s1091_s17 = smov 0   ;;  %s1093_s18 = smov 0  }
   0x3   :  { %s1095_s19 = smov 0   ;;  %s1097_s20 = smov 0  }
   0x4   :  { %s1099_s21 = smov 0   ;;  %s1101_s22 = smov 0  }
   0x5 LB: > { %s808_s23 = sadd.s32 4294967295, %s1059_s22   ;;  %s27_s24 = sadd.s32 1, %s1051_s20  ;;  %s1059_s22 = sphi %s1101_s22, %s18_s22   ;;  %s1055_s21 = sphi %s1099_s21, %s1400_s21   ;;  %s1051_s20 = sphi %s1097_s20, %s1399_s20   ;;  %s1047_s19 = sphi %s1095_s19, %s1398_s19   ;;  %s1043_s18 = sphi %s1093_s18, %s1397_s18   ;;  %s1039_s17 = sphi %s1091_s17, %s1396_s17   ;;  %s1035_s16 = sphi %s1089_s16, %s1395_s16   ;;  %s1031_s15 = sphi %s1087_s15, %s1394_s15  }
   0x6   : > { %s30_s25 = sadd.s32 1, %s1055_s21  ;;  %p28_p0 = scmp.ge.s32.totalorder %s27_s24, 2 }
   0x7   : > { %s810_s26 = sshll.u32 %s1055_s21, 1  ;;  %s809_s27 = sadd.s32 4294967294, %s1059_s22  }
   0x8   : > { %s140_s28 = sadd.s32 %s1051_s20, %s810_s26  ;;  %s1402_s24 = smov (%p28_p0, %s27_s24), 0 }
   0x9   : > { %s1404_s25 = smov (!%p28_p0, %s30_s25), %s1055_s21  ;;  %p156_p1 = scmp.ne.s32.totalorder %s1039_s17, %s1035_s16 }
   0xa   : > { %p157_p2 = scmp.eq.s32.totalorder %s808_s23, 3  ;;  %p32_p3 = scmp.ge.s32.totalorder %s1404_s25, 2 }
   0xb   : > { %p162_p4 = scmp.ne.s32.totalorder %s1035_s16, %s1031_s15  ;;  %p163_p6 = scmp.eq.s32.totalorder %s809_s27, 3 }
   0xc   : > { %p1140_p5 = por %p157_p2, %p156_p1  ;;  %s1406_s25 = smov (%p32_p3, %s1404_s25), 0 }
   0xd   : > { %p1146_p7 = por %p163_p6, %p162_p4  ;;  %p814_p8 = scmp.ge.s32.totalorder %s1059_s22, 1 }
   0xe   : > { %s811_s5 = sshll.u32 %s1406_s25, 1  ;;  %p210_p9 = scmp.lt.s32.totalorder %s1059_s22, 5 }
   0xf   : > { %s142_s6 = sadd.s32 %s811_s5, %s1402_s24  ;;  %s146_s7 = sadd.s32 1, %s1039_s17 }
  0x10   : > { %s143_s8 = ssub.s32 %s140_s28, %s142_s6  ;;  %p211_p10 = pnand %p814_p8, %p210_p9 }
  0x11   : > { %p144_p11 = scmp.eq.s32.totalorder %s143_s8, 0  ;;  %s816_s14 = sshll.u32 (!%p211_p10), %s1043_s18, 4 }
  0x12   : > { %214 = sbr.rel (%p211_p10) target bundleno = 340 (0x154), region = 32  ;;  %p259_p12 = scmp.lt.s32.totalorder (!%p211_p10), %s1047_s19, 1 }
  0x13   : > { %s1156_s9 = scalar_select %p144_p11, %s1039_s17, %s146_s7  }
  0x14   : > { %p261_p13 = scmp.lt.s32.totalorder (!%p211_p10), %s816_s14, 31  ;;  %s1061_s12 = smov (!%p211_p10), [#allocation2]  }
  0x15   : > { %s971_s13 = sshll.u32 (!%p211_p10), %s1061_s12, 4  ;;  %s972_s13 = int_to_ptr.vmem [resolvable:$false] %s971_s13 }
  0x17   : > { %v307_v0 = vld [vmem:[%s1389_s2 + $0x8] sm:$0xff]  ;;  %v306_v1 = vld [vmem:[%s1389_s2] sm:$0xff]  ;;  %s260_s23 = scalar_select %p259_p12, %s1047_s19, 1  ;;  %vm324_vm0 = vcmask 130048   ;;  %vm518_vm1 = vcmask 31744   ;;  %vm642_vm2 = vcmask 1040384  }
  0x18   : > { %864 = vmatprep.subr.mxu0 %v307_v0  ;;  %892 = vmatprep.subr.mxu1 %v307_v0  ;;  %s1408_s14 = smov (!%p261_p13, %s816_s14), 31  ;;  %vm644_vm3 = vcmask 25600  }
  0x19   : > { %865 = vmatpush3.msra.mxu0 %v307_v0  ;;  %894 = vmatpush3.msra.mxu1 %v307_v0  ;;  %s817_s26 = sshll.u32 %s260_s23, 5  ;;  %s255_s23 = sand.u32 1, %s1035_s16  }
  0x1a   : > { %866 = vmatprep.subr.mxu0 %v306_v1  ;;  %893 = vmatprep.subr.mxu1 %v306_v1  ;;  %s264_s27 = sadd.s32 %s817_s26, %s1408_s14  ;;  %s815_s26 = sshll.u32 %s255_s23, 1 }
  0x1b   : > { %867 = vmatpush3.msra.mxu0 %v306_v1  ;;  %895 = vmatpush3.msra.mxu1 %v306_v1  ;;  %s1167_s28 = sshll.u32 %s264_s27, 3  ;;  %s842_s27 = sshll.u32 %s1047_s19, 1 }
  0x1c   : > { %s266_s7 = scalar_lea.vmem %s1387_s0, %s1167_s28  ;;  %s1193_s11 = scalar_lea.vmem %s1388_s1, %s1167_s28 }
  0x1d   : > { %v290_v2 = vld [vmem:[%s266_s7] sm:$0xff]  ;;  %v291_v3 = vld [vmem:[%s266_s7 + $0x8] sm:$0xff]  ;;  %v292_v4 = vld [vmem:[%s266_s7 + $0x10] sm:$0xff]  ;;  %s1200_s14 = scalar_lea.vmem %s1390_s3, %s1167_s28  ;;  %s668_s28 = sadd.s32 %s1043_s18, %s842_s27 }
  0x1e   : > { %868 = vmatprep.mubr.msk.f32.mxu0 %vm324_vm0, %v290_v2  ;;  %v298_v5 = vld [vmem:[%s266_s7 + $0x40] sm:$0xff]  ;;  %v293_v6 = vld [vmem:[%s266_s7 + $0x18] sm:$0xff]  ;;  %v299_v7 = vld [vmem:[%s266_s7 + $0x48] sm:$0xff]  ;;  %s843_s5 = sshll.u32 %s668_s28, 5  ;;  %s257_s6 = scalar_lea.vmem [#allocation2], %s815_s26 }
  0x1f   : > { %869 = vmatmul.mubr.msk.f32.vlgmr.msra.gmra.mxu0 %vm324_vm0, %v291_v3  ;;  %880 = vmatprep.mubr.msk.f32.mxu1 %vm324_vm0, %v298_v5  ;;  %v300_v8 = vld [vmem:[%s266_s7 + $0x50] sm:$0xff]  ;;  %v294_v9 = vld [vmem:[%s266_s7 + $0x20] sm:$0xff]  ;;  %v301_v10 = vld [vmem:[%s266_s7 + $0x58] sm:$0xff]  ;;  %s656_s19 = scalar_lea.sflag [#allocation3], %s255_s23 }
  0x20   : > { %871 = vmatprep.mubr.msk.f32.mxu0 %vm324_vm0, %v292_v4  ;;  %881 = vmatmul.mubr.msk.f32.vlgmr.msra.gmra.mxu1 %vm324_vm0, %v299_v7  ;;  %v302_v11 = vld [vmem:[%s266_s7 + $0x60] sm:$0xff]  ;;  %v295_v12 = vld [vmem:[%s266_s7 + $0x28] sm:$0xff]  ;;  %v296_v13 = vld [vmem:[%s266_s7 + $0x30] sm:$0xff] }
  0x21   : > { %883 = vmatprep.mubr.msk.f32.mxu1 %vm324_vm0, %v300_v8  ;;  %v303_v14 = vld [vmem:[%s266_s7 + $0x68] sm:$0xff]  ;;  %v304_v15 = vld [vmem:[%s266_s7 + $0x70] sm:$0xff]  ;;  %v297_v16 = vld [vmem:[%s266_s7 + $0x38] sm:$0xff] }
  0x22   : > { %v305_v17 = vld [vmem:[%s266_s7 + $0x78] sm:$0xff]  ;;  %v309_v18 = vld [vmem:[%s1193_s11 + $0x8] sm:$0xff]  ;;  %v308_v20 = vld [vmem:[%s1193_s11] sm:$0xff]  ;;  %s675_s7 = sshll.u32 %s257_s6, 4  ;;  %s676_s7 = int_to_ptr.vmem [resolvable:$true] %s675_s7 }
  0x23   : > { %872 = vmatmul.mubr.msk.f32.gmra.mxu0 %vm324_vm0, %v293_v6  ;;  %v317_v21 = vld [vmem:[%s1193_s11 + $0x48] sm:$0xff]  ;;  %v311_v24 = vld [vmem:[%s1193_s11 + $0x18] sm:$0xff]  ;;  %v316_v26 = vld [vmem:[%s1193_s11 + $0x40] sm:$0xff]  ;;  %s967_s18 = scalar_lea.vmem %s676_s7, 32  ;;  %p974_p3 = scmp.lt.s32.totalorder %s676_s7, %s972_s13 }
  0x24   : > { %874 = vmatprep.mubr.msk.f32.mxu0 %vm324_vm0, %v294_v9  ;;  %884 = vmatmul.mubr.msk.f32.gmra.mxu1 %vm324_vm0, %v301_v10  ;;  %v310_v30 = vld [vmem:[%s1193_s11 + $0x10] sm:$0xff]  ;;  %v319_v32 = vld [vmem:[%s1193_s11 + $0x58] sm:$0xff]  ;;  %v313_v37 = vld [vmem:[%s1193_s11 + $0x28] sm:$0xff]  ;;  %p968_p0 = scmp.ne.s32.totalorder %s676_s7, %s967_s18 }
  0x25   : > { %886 = vmatprep.mubr.msk.f32.mxu1 %vm324_vm0, %v302_v11  ;;  %v318_v39 = vld [vmem:[%s1193_s11 + $0x50] sm:$0xff]  ;;  %v312_v45 = vld [vmem:[%s1193_s11 + $0x20] sm:$0xff]  ;;  %v321_v47 = vld [vmem:[%s1193_s11 + $0x68] sm:$0xff] }
  0x26   : > { %v315_v53 = vld [vmem:[%s1193_s11 + $0x38] sm:$0xff]  ;;  %v320_v55 = vld [vmem:[%s1193_s11 + $0x60] sm:$0xff]  ;;  %v314_v61 = vld [vmem:[%s1193_s11 + $0x30] sm:$0xff]  ;;  %p969_p1 = pnand %p968_p0, %p1140_p5 }
  0x27   : > { %875 = vmatmul.mubr.msk.f32.gmra.mxu0 %vm324_vm0, %v295_v12  ;;  %v323_v63 = vld [vmem:[%s1193_s11 + $0x78] sm:$0xff]  ;;  %v322_v6 = vld [vmem:[%s1193_s11 + $0x70] sm:$0xff]  ;;  %s1340_s11 = scalar_lea.hbm %s1391_s4, %s843_s5 }
  0x28   : > { %877 = vmatprep.mubr.msk.f32.mxu0 %vm324_vm0, %v296_v13  ;;  %887 = vmatmul.mubr.msk.f32.gmra.mxu1 %vm324_vm0, %v303_v14  ;;  %p970_p2 = pneg %p969_p1 }
  0x29   : > { %889 = vmatprep.mubr.msk.f32.mxu1 %vm324_vm0, %v304_v15 }
  0x2b   : > { %878 = vmatmul.mubr.msk.f32.gmra.mxu0 %vm324_vm0, %v297_v16 }
  0x2c   : > { %890 = vmatmul.mubr.msk.f32.gmra.mxu1 %vm324_vm0, %v305_v17 }
  0xdf   : > { %v870_v19 = vpop.f32.mrf.mxu0 }
  0xe0   : > { %v1204_v22 = vadd.f32 %v870_v19, %v309_v18  ;;  %v882_v25 = vpop.f32.mrf.mxu1 }
  0xe1   : > { %v439_v23 = vpop.f32.mrf.mxu0  ;;  %v1213_v28 = vadd.f32 %v882_v25, %v317_v21 }
  0xe2   : > { %520 = vst.msk [vmem:[%s1200_s14 + $0x8] sm:$0xff] %vm518_vm1, %v1204_v22  ;;  %v1211_v27 = vadd.f32 %v439_v23, %v308_v20  ;;  %v479_v31 = vpop.f32.mrf.mxu1  ;;  %v536_v40 = vsel %vm518_vm1, %v1204_v22, 0.0 }
  0xe3   : > { %v873_v29 = vpop.f32.mrf.mxu0  ;;  %528 = vst.msk [vmem:[%s1200_s14 + $0x48] sm:$0xff] %vm518_vm1, %v1213_v28  ;;  %v1227_v35 = vadd.f32 %v479_v31, %v316_v26  ;;  %v552_v19 = vsel %vm518_vm1, %v1213_v28, 0.0 }
  0xe4   : > { %519 = vst.msk [vmem:[%s1200_s14] sm:$0xff] %vm518_vm1, %v1211_v27  ;;  %v535_v33 = vsel %vm518_vm1, %v1211_v27, 0.0  ;;  %v1222_v34 = vadd.f32 %v873_v29, %v311_v24  ;;  %v885_v38 = vpop.f32.mrf.mxu1 }
  0xe5   : > { %v449_v36 = vpop.f32.mrf.mxu0  ;;  %527 = vst.msk [vmem:[%s1200_s14 + $0x40] sm:$0xff] %vm518_vm1, %v1227_v35  ;;  %v1241_v42 = vadd.f32 %v885_v38, %v319_v32  ;;  %v537_v43 = vadd.f32 %v536_v40, %v535_v33  ;;  %v550_v17 = vsel %vm518_vm1, %v1227_v35, 0.0 }
  0xe6   : > { %522 = vst.msk [vmem:[%s1200_s14 + $0x18] sm:$0xff] %vm518_vm1, %v1222_v34  ;;  %v1236_v41 = vadd.f32 %v449_v36, %v310_v30  ;;  %v489_v46 = vpop.f32.mrf.mxu1  ;;  %v540_v56 = vsel %vm518_vm1, %v1222_v34, 0.0 }
  0xe7   : > { %v876_v44 = vpop.f32.mrf.mxu0  ;;  %530 = vst.msk [vmem:[%s1200_s14 + $0x58] sm:$0xff] %vm518_vm1, %v1241_v42  ;;  %v1255_v50 = vadd.f32 %v489_v46, %v318_v39  ;;  %v556_v24 = vsel %vm518_vm1, %v1241_v42, 0.0 }
  0xe8   : > { %521 = vst.msk [vmem:[%s1200_s14 + $0x10] sm:$0xff] %vm518_vm1, %v1236_v41  ;;  %v538_v48 = vsel %vm518_vm1, %v1236_v41, 0.0  ;;  %v1250_v49 = vadd.f32 %v876_v44, %v313_v37  ;;  %v888_v54 = vpop.f32.mrf.mxu1 }
  0xe9   : > { %v539_v51 = vadd.f32 %v538_v48, %v537_v43  ;;  %v459_v52 = vpop.f32.mrf.mxu0  ;;  %529 = vst.msk [vmem:[%s1200_s14 + $0x50] sm:$0xff] %vm518_vm1, %v1255_v50  ;;  %v1267_v58 = vadd.f32 %v888_v54, %v321_v47  ;;  %v554_v21 = vsel %vm518_vm1, %v1255_v50, 0.0 }
  0xea   : > { %524 = vst.msk [vmem:[%s1200_s14 + $0x28] sm:$0xff] %vm518_vm1, %v1250_v49  ;;  %v460_v57 = vadd.f32 %v459_v52, %v312_v45  ;;  %v499_v62 = vpop.f32.mrf.mxu1  ;;  %v544_v7 = vsel %vm518_vm1, %v1250_v49, 0.0 }
  0xeb   : > { %v541_v59 = vadd.f32 %v540_v56, %v539_v51  ;;  %v879_v60 = vpop.f32.mrf.mxu0  ;;  %532 = vst.msk [vmem:[%s1200_s14 + $0x68] sm:$0xff] %vm518_vm1, %v1267_v58  ;;  %v500_v2 = vadd.f32 %v499_v62, %v320_v55  ;;  %v560_v30 = vsel %vm518_vm1, %v1267_v58, 0.0 }
  0xec   : > { %523 = vst.msk [vmem:[%s1200_s14 + $0x20] sm:$0xff] %vm518_vm1, %v460_v57  ;;  %v542_v0 = vsel %vm518_vm1, %v460_v57, 0.0  ;;  %v475_v1 = vadd.f32 %v879_v60, %v315_v53  ;;  %v891_v5 = vpop.f32.mrf.mxu1 }
  0xed   : > { %v543_v3 = vadd.f32 %v542_v0, %v541_v59  ;;  %v469_v4 = vpop.f32.mrf.mxu0  ;;  %531 = vst.msk [vmem:[%s1200_s14 + $0x60] sm:$0xff] %vm518_vm1, %v500_v2  ;;  %v515_v9 = vadd.f32 %v891_v5, %v323_v63  ;;  %v558_v26 = vsel %vm518_vm1, %v500_v2, 0.0 }
  0xee   : > { %526 = vst.msk [vmem:[%s1200_s14 + $0x38] sm:$0xff] %vm518_vm1, %v475_v1  ;;  %v470_v8 = vadd.f32 %v469_v4, %v314_v61  ;;  %v509_v11 = vpop.f32.mrf.mxu1  ;;  %v548_v15 = vsel %vm518_vm1, %v475_v1, 0.0 }
  0xef   : > { %v545_v10 = vadd.f32 %v544_v7, %v543_v3  ;;  %534 = vst.msk [vmem:[%s1200_s14 + $0x78] sm:$0xff] %vm518_vm1, %v515_v9  ;;  %v510_v13 = vadd.f32 %v509_v11, %v322_v6  ;;  %v564_v36 = vsel %vm518_vm1, %v515_v9, 0.0 }
  0xf0   : > { %525 = vst.msk [vmem:[%s1200_s14 + $0x30] sm:$0xff] %vm518_vm1, %v470_v8  ;;  %v546_v12 = vsel %vm518_vm1, %v470_v8, 0.0 }
  0xf1   : > { %v547_v14 = vadd.f32 %v546_v12, %v545_v10  ;;  %533 = vst.msk [vmem:[%s1200_s14 + $0x70] sm:$0xff] %vm518_vm1, %v510_v13  ;;  %v562_v32 = vsel %vm518_vm1, %v510_v13, 0.0  ;;  %s973_s14 = scalar_lea.vmem %s972_s13, 64 }
  0xf2   : > { %p975_p4 = scmp.lt.s32.totalorder %s973_s14, %s967_s18 }
  0xf3   : > { %v549_v16 = vadd.f32 %v548_v15, %v547_v14 }
  0xf4   : > { %p976_p6 = por %p975_p4, %p974_p3 }
  0xf5   : > { %v551_v18 = vadd.f32 %v550_v17, %v549_v16 }
  0xf6   : > { %p977_p8 = pnand %p976_p6, %p970_p2 }
  0xf7   : > { %v553_v20 = vadd.f32 %v552_v19, %v551_v18 }
  0xf9   : > { %v555_v23 = vadd.f32 %v554_v21, %v553_v20 }
  0xfb   : > { %v557_v25 = vadd.f32 %v556_v24, %v555_v23 }
  0xfd   : > { %v559_v29 = vadd.f32 %v558_v26, %v557_v25 }
  0xff   : > { %v561_v31 = vadd.f32 %v560_v30, %v559_v29 }
 0x101   : > { %v563_v33 = vadd.f32 %v562_v32, %v561_v31 }
 0x103   : > { %v565_v37 = vadd.f32 %v564_v36, %v563_v33 }
 0x105   : > { %v566_v38 = vrot.slane %v565_v37, 4 }
 0x107   : > { %v567_v39 = vadd.f32 %v566_v38, %v565_v37 }
 0x109   : > { %v568_v40 = vrot.slane %v567_v39, 2 }
 0x10b   : > { %v569_v43 = vadd.f32 %v568_v40, %v567_v39 }
 0x10d   : > { %v570_v44 = vrot.slane %v569_v43, 1 }
 0x10f   : > { %v1305_v45 = vadd.f32 %v570_v44, %v569_v43 }
 0x111   : > { %v572_v46 = vmul.f32 0.0078125, %v1305_v45 }
 0x113   : > { %v573_v47 = vsub.f32 %v1211_v27, %v572_v46  ;;  %v574_v48 = vsub.f32 %v1204_v22, %v572_v46  ;;  %v575_v51 = vsub.f32 %v1236_v41, %v572_v46  ;;  %v576_v52 = vsub.f32 %v1222_v34, %v572_v46 }
 0x114   : > { %v577_v53 = vsub.f32 %v460_v57, %v572_v46  ;;  %v578_v54 = vsub.f32 %v1250_v49, %v572_v46  ;;  %v579_v55 = vsub.f32 %v470_v8, %v572_v46  ;;  %v580_v56 = vsub.f32 %v475_v1, %v572_v46 }
 0x115   : > { %v581_v59 = vsub.f32 %v1227_v35, %v572_v46  ;;  %v582_v60 = vsub.f32 %v1213_v28, %v572_v46  ;;  %v583_v61 = vsub.f32 %v1255_v50, %v572_v46  ;;  %v584_v62 = vsub.f32 %v1241_v42, %v572_v46 }
 0x116   : > { %v585_v27 = vsub.f32 %v500_v2, %v572_v46  ;;  %v586_v22 = vsub.f32 %v1267_v58, %v572_v46  ;;  %v587_v63 = vsub.f32 %v510_v13, %v572_v46  ;;  %v588_v41 = vsub.f32 %v515_v9, %v572_v46 }
 0x117   : > { %v589_v0 = vmul.f32 %v573_v47, %v573_v47  ;;  %v590_v34 = vmul.f32 %v574_v48, %v574_v48  ;;  %v591_v57 = vmul.f32 %v575_v51, %v575_v51  ;;  %v592_v3 = vmul.f32 %v576_v52, %v576_v52 }
 0x118   : > { %v594_v49 = vmul.f32 %v578_v54, %v578_v54  ;;  %v595_v4 = vmul.f32 %v579_v55, %v579_v55  ;;  %v596_v1 = vmul.f32 %v580_v56, %v580_v56  ;;  %v597_v5 = vmul.f32 %v581_v59, %v581_v59 }
 0x119   : > { %v598_v35 = vmul.f32 %v582_v60, %v582_v60  ;;  %v599_v6 = vmul.f32 %v583_v61, %v583_v61  ;;  %v593_v28 = vmul.f32 %v577_v53, %v577_v53  ;;  %v600_v7 = vmul.f32 %v584_v62, %v584_v62 }
 0x11a   : > { %v601_v50 = vmul.f32 %v585_v27, %v585_v27  ;;  %v602_v8 = vmul.f32 %v586_v22, %v586_v22  ;;  %v603_v42 = vmul.f32 %v587_v63, %v587_v63  ;;  %v604_v2 = vmul.f32 %v588_v41, %v588_v41 }
 0x11b   : > { %v605_v58 = vsel %vm518_vm1, %v589_v0, 0.0  ;;  %v606_v9 = vsel %vm518_vm1, %v590_v34, 0.0  ;;  %v608_v11 = vsel %vm518_vm1, %v591_v57, 0.0  ;;  %v614_v12 = vsel %vm518_vm1, %v594_v49, 0.0 }
 0x11c   : > { %v607_v10 = vadd.f32 %v606_v9, %v605_v58  ;;  %v616_v13 = vsel %vm518_vm1, %v595_v4, 0.0  ;;  %v618_v14 = vsel %vm518_vm1, %v596_v1, 0.0  ;;  %v620_v15 = vsel %vm518_vm1, %v597_v5, 0.0 }
 0x11d   : > { %v622_v16 = vsel %vm518_vm1, %v598_v35, 0.0  ;;  %v624_v17 = vsel %vm518_vm1, %v599_v6, 0.0  ;;  %v626_v19 = vsel %vm518_vm1, %v600_v7, 0.0  ;;  %v628_v20 = vsel %vm518_vm1, %v601_v50, 0.0 }
 0x11e   : > { %v609_v18 = vadd.f32 %v608_v11, %v607_v10  ;;  %v630_v21 = vsel %vm518_vm1, %v602_v8, 0.0  ;;  %v610_v23 = vsel %vm518_vm1, %v592_v3, 0.0  ;;  %v632_v24 = vsel %vm518_vm1, %v603_v42, 0.0 }
 0x11f   : > { %v634_v25 = vsel %vm518_vm1, %v604_v2, 0.0  ;;  %v612_v29 = vsel %vm518_vm1, %v593_v28, 0.0 }
 0x120   : > { %v611_v26 = vadd.f32 %v610_v23, %v609_v18 }
 0x122   : > { %v613_v30 = vadd.f32 %v612_v29, %v611_v26 }
 0x124   : > { %v615_v31 = vadd.f32 %v614_v12, %v613_v30 }
 0x126   : > { %v617_v32 = vadd.f32 %v616_v13, %v615_v31 }
 0x128   : > { %v619_v33 = vadd.f32 %v618_v14, %v617_v32 }
 0x12a   : > { %v621_v36 = vadd.f32 %v620_v15, %v619_v33 }
 0x12c   : > { %v623_v37 = vadd.f32 %v622_v16, %v621_v36 }
 0x12e   : > { %v625_v38 = vadd.f32 %v624_v17, %v623_v37 }
 0x130   : > { %v627_v39 = vadd.f32 %v626_v19, %v625_v38 }
 0x132   : > { %v629_v40 = vadd.f32 %v628_v20, %v627_v39 }
 0x134   : > { %v631_v43 = vadd.f32 %v630_v21, %v629_v40 }
 0x136   : > { %v633_v44 = vadd.f32 %v632_v24, %v631_v43 }
 0x138   : > { %v635_v46 = vadd.f32 %v634_v25, %v633_v44 }
 0x13a   : > { %v636_v47 = vrot.slane %v635_v46, 4 }
 0x13c   : > { %v637_v48 = vadd.f32 %v636_v47, %v635_v46 }
 0x13e   : > { %v638_v51 = vrot.slane %v637_v48, 2 }
 0x140   : > { %v639_v52 = vadd.f32 %v638_v51, %v637_v48 }
 0x142   : > { %v640_v53 = vrot.slane %v639_v52, 1 }
 0x144   : > { %v641_v54 = vadd.f32 %v640_v53, %v639_v52 }
 0x146   : > { %v643_v55 = vsel %vm642_vm2, %v1305_v45, %v641_v54 }
 0x147   : > { %645 = vst.msk [vmem:[%s257_s6] sm:$0x3] %vm644_vm3, %v643_v55 }
 0x148   : > { %980 = shalt.err (!%p977_p8)
}
 0x149   : > { %s981_s26 = scalar_lea.hbm %s1340_s11, 32  ;;  %s985_s28 = scalar_lea.hbm %s1391_s4, 128 }
 0x14a   : > { %p982_p9 = scmp.ne.s32.totalorder %s1340_s11, %s981_s26  ;;  %p986_p12 = scmp.lt.s32.totalorder %s1340_s11, %s1391_s4 }
 0x14b   : > { %p987_p13 = scmp.lt.s32.totalorder %s985_s28, %s981_s26 }
 0x14c   : > { %p983_p10 = pnand %p982_p9, %p1140_p5 }
 0x14d   : > { %p988_p0 = por %p987_p13, %p986_p12 }
 0x14e   : > { %p984_p11 = pneg %p983_p10 }
 0x150   : > { %p989_p1 = pnand %p988_p0, %p984_p11 }
 0x152   : > { %992 = shalt.err (!%p989_p1)
}
 0x153   : > { %896 = dma.vmem_to_hbm [thread:$0]  (%p1140_p5), %s676_s7, 32, %s1340_s11, %s656_s19  }
 0x154 PF: > { %p902_p2 = scmp.ge.s32.totalorder %s1059_s22, 2  ;;  %s699_s8 = sand.u32 1, %s1031_s15  }
 0x155   : > { %s700_s10 = scalar_lea.sflag [#allocation3], %s699_s8 }
 0x156   : > { %p899_p3 = pnand %p902_p2, %p1146_p7 }
 0x158   : > { %p900_p4 = pneg %p899_p3 }
 0x15a   : > { %1026 = dma.done.wait (%p900_p4), %s700_s10, 32  }
 0x15b   : > { %1028 = vsyncadd (%p900_p4), %s700_s10, 4294967264  ;;  %s18_s22 = sadd.s32 1, %s1059_s22   ;;  %s1394_s15 = smov %s1035_s16 }
 0x15c   : > { %p15_p6 = scmp.ge.s32.totalorder %s18_s22, 6   ;;  %s1395_s16 = smov %s1039_s17 }
 0x15d   : > { %s1396_s17 = smov %s1156_s9  ;;  %s1397_s18 = smov %s1051_s20 }
 0x15e   : > { %s1398_s19 = smov %s1055_s21  ;;  %s1399_s20 = smov %s1402_s24 }
 0x15f   : > { %s1400_s21 = smov %s1406_s25  ;;  %17 = sbr.rel (!%p15_p6) target bundleno = 5 (0x5), region = 82 }
 0x164   :  { %705 = vsyncpa [#allocation3], 1 }
 0x165   :  { %707 = vsyncpa [#allocation3 + $0x1], 1 }

</bundles_post_ra>
